<compile_context>
chip_gen: v6e
topology: v6e:2x2x1
jax: 0.10.0
libtpu: 0.0.40
codegen_flags: <defaults>
</compile_context>

<pallas_src>
import math

import jax
import jax.numpy as jnp
from jax.experimental import pallas as pl
from jax.experimental.pallas import tpu as pltpu

_LOG2 = math.log(2.0)
_LANE = 128


def _tanh_flow_kernel(x_ref, sld_ref, y_ref, sld_out_ref):
    x = x_ref[...]
    # Numerically stable softplus(-2x) = max(-2x, 0) + log1p(exp(-|-2x|))
    z = -2.0 * x
    softplus = jnp.maximum(z, 0.0) + jnp.log1p(jnp.exp(-jnp.abs(z)))
    logdet = -2.0 * (x - _LOG2 + softplus)
    y_ref[...] = jnp.tanh(x).astype(y_ref.dtype)
    sld_out_ref[...] = (sld_ref[...] + logdet).astype(sld_out_ref.dtype)


def tanh_flow(x, sum_logdets):
    """BNAF Tanh flow: returns (tanh(x), sum_logdets + logdet).

    x and sum_logdets must have the same number of elements (PyTorch
    `view_as` semantics); outputs keep each input's original shape.
    """
    assert x.size == sum_logdets.size, "sum_logdets must be view-compatible with x"
    x_shape, sld_shape = x.shape, sum_logdets.shape
    n = x.size

    # ---- lane-dense 2-D layout -------------------------------------------
    lane_w = 1024 if n >= 1024 else _LANE          # last dim: big multiple of 128
    rows = pl.cdiv(n, lane_w)
    # Row tile: multiple of 8 sublanes, capped at 512 rows (2 MiB f32 tile).
    tm = min(512, ((rows + 7) // 8) * 8)
    rows_pad = ((rows + tm - 1) // tm) * tm
    n_pad = rows_pad * lane_w

    xf = jnp.ravel(x)
    sf = jnp.ravel(sum_logdets)
    pad = n_pad - n
    if pad:
        xf = jnp.pad(xf, (0, pad))
        sf = jnp.pad(sf, (0, pad))
    x2 = xf.reshape(rows_pad, lane_w)
    s2 = sf.reshape(rows_pad, lane_w)

    # ---- tiled, pipelined pallas_call ------------------------------------
    grid = (rows_pad // tm,)
    spec = pl.BlockSpec((tm, lane_w), lambda i: (i, 0))

    y2, sld2 = pl.pallas_call(
        _tanh_flow_kernel,
        out_shape=(
            jax.ShapeDtypeStruct((rows_pad, lane_w), x.dtype),
            jax.ShapeDtypeStruct((rows_pad, lane_w), sum_logdets.dtype),
        ),
        grid=grid,
        in_specs=[spec, spec],
        out_specs=(spec, spec),
        input_output_aliases={1: 1},  # sum_logdets accumulates in place
        compiler_params=pltpu.CompilerParams(
            dimension_semantics=("parallel",),        # shard across TCs on v7x
            vmem_limit_bytes=48 * 1024 * 1024,        # >= 16 MiB footprint + slack
        ),
    )(x2, s2)

    y = y2.reshape(-1)[:n].reshape(x_shape)
    sld = sld2.reshape(-1)[:n].reshape(sld_shape)
    return y, sld


def _reference(x, sum_logdets):
    logdet = -2.0 * (x - _LOG2 + jax.nn.softplus(-2.0 * x))
    return jnp.tanh(x), sum_logdets + logdet


if __name__ == "__main__":
    key = jax.random.PRNGKey(0)
    kx, ks = jax.random.split(key)
    B, D = 8, 32
    x = jax.random.normal(kx, (B, D), dtype=jnp.float32)
    sum_logdets = jax.random.normal(ks, (B, D), dtype=jnp.float32) * 0.1

    y, new_sld = tanh_flow(x, sum_logdets)
    jax.block_until_ready((y, new_sld))

    y_ref, sld_ref = _reference(x, sum_logdets)
    assert y.shape == x.shape and new_sld.shape == sum_logdets.shape
    assert jnp.allclose(y, y_ref, atol=1e-5, rtol=1e-5)
    assert jnp.allclose(new_sld, sld_ref, atol=1e-5, rtol=1e-5)

    print("KERNEL_OK")
</pallas_src>

<mosaic_0001>
module attributes {stable_mosaic.version = 11 : i64} {
  func.func @_tanh_flow_kernel(%arg0: i32, %arg1: memref<8x128xf32, #tpu.memory_space<vmem>>, %arg2: memref<8x128xf32, #tpu.memory_space<vmem>>, %arg3: memref<8x128xf32, #tpu.memory_space<vmem>>, %arg4: memref<8x128xf32, #tpu.memory_space<vmem>>) attributes {dimension_semantics = [#tpu.dimension_semantics<parallel>], iteration_bounds = array<i64: 1>, scalar_prefetch = 0 : i64, scratch_operands = 0 : i64, tpu.core_type = #tpu.core_type<tc>, window_params = [{transform_indices = @transform_0, window_bounds = array<i64: 8, 128>}, {transform_indices = @transform_1, window_bounds = array<i64: 8, 128>}, {transform_indices = @transform_2, window_bounds = array<i64: 8, 128>}, {transform_indices = @transform_3, window_bounds = array<i64: 8, 128>}]} {
    %c0 = arith.constant 0 : index
    %c0_0 = arith.constant 0 : index
    %0 = vector.load %arg1[%c0, %c0_0] : memref<8x128xf32, #tpu.memory_space<vmem>>, vector<8x128xf32>
    %cst = arith.constant -2.000000e+00 : f32
    %1 = vector.broadcast %cst : f32 to vector<8x128xf32>
    %2 = arith.mulf %1, %0 : vector<8x128xf32>
    %cst_1 = arith.constant 0.000000e+00 : f32
    %3 = vector.broadcast %cst_1 : f32 to vector<8x128xf32>
    %4 = arith.maximumf %2, %3 : vector<8x128xf32>
    %5 = math.absf %2 : vector<8x128xf32>
    %cst_2 = arith.constant 0.000000e+00 : f32
    %6 = vector.broadcast %cst_2 : f32 to vector<8x128xf32>
    %7 = arith.subf %6, %5 : vector<8x128xf32>
    %8 = math.exp %7 : vector<8x128xf32>
    %9 = math.log1p %8 : vector<8x128xf32>
    %10 = arith.addf %4, %9 : vector<8x128xf32>
    %cst_3 = arith.constant 0.693147182 : f32
    %11 = vector.broadcast %cst_3 : f32 to vector<8x128xf32>
    %12 = arith.subf %0, %11 : vector<8x128xf32>
    %13 = arith.addf %12, %10 : vector<8x128xf32>
    %cst_4 = arith.constant -2.000000e+00 : f32
    %14 = vector.broadcast %cst_4 : f32 to vector<8x128xf32>
    %15 = arith.mulf %14, %13 : vector<8x128xf32>
    %16 = math.tanh %0 : vector<8x128xf32>
    %c0_5 = arith.constant 0 : index
    %c0_6 = arith.constant 0 : index
    %17 = vector.load %arg3[%c0_5, %c0_6] : memref<8x128xf32, #tpu.memory_space<vmem>>, vector<8x128xf32>
    tpu.vector_store %arg3[%c0_5, %c0_6], %16 {strides = array<i32>} : memref<8x128xf32, #tpu.memory_space<vmem>>, vector<8x128xf32>,
    %c0_7 = arith.constant 0 : index
    %c0_8 = arith.constant 0 : index
    %18 = vector.load %arg2[%c0_7, %c0_8] : memref<8x128xf32, #tpu.memory_space<vmem>>, vector<8x128xf32>
    %19 = arith.addf %18, %15 : vector<8x128xf32>
    %c0_9 = arith.constant 0 : index
    %c0_10 = arith.constant 0 : index
    %20 = vector.load %arg4[%c0_9, %c0_10] : memref<8x128xf32, #tpu.memory_space<vmem>>, vector<8x128xf32>
    tpu.vector_store %arg4[%c0_9, %c0_10], %19 {strides = array<i32>} : memref<8x128xf32, #tpu.memory_space<vmem>>, vector<8x128xf32>,
    return
  }
  func.func @transform_0(%arg0: i32) -> (i32, i32) {
    %c0_i32 = arith.constant 0 : i32
    %c0_i32_0 = arith.constant 0 : i32
    return %arg0, %c0_i32 : i32, i32
  }
  func.func @transform_1(%arg0: i32) -> (i32, i32) {
    %c0_i32 = arith.constant 0 : i32
    %c0_i32_0 = arith.constant 0 : i32
    return %arg0, %c0_i32 : i32, i32
  }
  func.func @transform_2(%arg0: i32) -> (i32, i32) {
    %c0_i32 = arith.constant 0 : i32
    %c0_i32_0 = arith.constant 0 : i32
    return %arg0, %c0_i32 : i32, i32
  }
  func.func @transform_3(%arg0: i32) -> (i32, i32) {
    %c0_i32 = arith.constant 0 : i32
    %c0_i32_0 = arith.constant 0 : i32
    return %arg0, %c0_i32 : i32, i32
  }
}

</mosaic_0001>

<bundles_post_ra>
// kernel: tpu_custom_call.1
= control target key start
LH: loop header
LB: loop body
LE: loop exit
PB: predicated region body
PF: predicated region fallthrough
CT: control target
= control target key end

     0   :  { %9 = vsyncpa [#allocation3], 0  ;;  %s192_s0 = inlined_call_operand.vmem [shape: f32[8,128], index: 0, kind: input, shape index: {}]   ;;  %s193_s1 = inlined_call_operand.hbm [shape: f32[8,128], index: 1, kind: input, shape index: {}, may-alias: {1,3}]   ;;  %s194_s2 = inlined_call_operand.hbm [shape: f32[8,128], index: 2, kind: output, shape index: {0}]   ;;  %s195_s3 = inlined_call_operand.hbm [shape: f32[8,128], index: 3, kind: output, shape index: {1}, may-alias: {1,3}]  }
   0x1   :  { %10 = vsyncpa [#allocation4], 0 }
   0x2   :  { %11 = vsyncpa [#allocation7], 0  ;;  %s157_s12 = smov [#allocation2]  }
   0x3   :  { %s20_s13 = sshll.u32 %s157_s12, 4  ;;  %s21_s13 = int_to_ptr.vmem [resolvable:$true] %s20_s13 }
   0x4   :  { %s99_s14 = scalar_lea.vmem %s21_s13, 128  ;;  %p104_p1 = scmp.lt.s32.totalorder %s21_s13, %s21_s13 }
   0x5   :  { %p100_p0 = scmp.ne.s32.totalorder %s21_s13, %s99_s14  ;;  %p105_p2 = scmp.lt.s32.totalorder %s99_s14, %s99_s14 }
   0x7   :  { %p106_p3 = por %p105_p2, %p104_p1 }
   0x9   :  { %p107_p4 = pnand %p106_p3, %p100_p0 }
   0xb   :  { %110 = shalt.err (!%p107_p4)
}
   0xc   :  { %23 = dma.hbm_to_vmem [thread:$0]  %s193_s1, 128, %s21_s13, [#allocation3]  }
   0xd   :  { %151 = dma.done.wait [#allocation3], 128  }
   0xe   :  { %152 = vsyncadd [#allocation3], 4294967168  ;;  %v27_v0 = vld [vmem:[%s192_s0] sm:$0xff]  ;;  %s158_s19 = smov [#allocation5]  }
   0xf   :  { %85 = vtanh.f32 %v27_v0  ;;  %v28_v1 = vmul.f32 -2.0, %v27_v0  ;;  %s58_s20 = sshll.u32 %s158_s19, 4  ;;  %s59_s20 = int_to_ptr.vmem [resolvable:$true] %s58_s20 }
  0x10   :  { %s111_s21 = scalar_lea.vmem %s59_s20, 128  ;;  %p116_p6 = scmp.lt.s32.totalorder %s59_s20, %s59_s20 }
  0x11   :  { %v30_v2 = vand.u32 2147483647, %v28_v1  ;;  %p112_p5 = scmp.ne.s32.totalorder %s59_s20, %s111_s21  ;;  %p117_p7 = scmp.lt.s32.totalorder %s111_s21, %s111_s21 }
  0x13   :  { %v31_v3 = vsub.f32 0.0, %v30_v2  ;;  %p118_p8 = por %p117_p7, %p116_p6 }
  0x15   :  { %v32_v4 = vmul.f32 1.442695, %v31_v3  ;;  %p119_p9 = pnand %p118_p8, %p112_p5 }
  0x17   :  { %87 = vpow2.f32 %v32_v4 }
  0x1c   :  { %v86_v5 = vpop.eup %85 }
  0x1d   :  { %48 = vst [vmem:[#allocation5] sm:$0xff] %v86_v5 }
  0x1e   :  { %122 = shalt.err (!%p119_p9)
}
  0x1f   :  { %61 = dma.vmem_to_hbm [thread:$0]  %s59_s20, 128, %s194_s2, [#allocation4]   ;;  %v29_v13 = vmax.f32 %v28_v1, 0.0  ;;  %v81_v15 = vadd.f32 -0.6931472, %v27_v0  ;;  %v49_v19 = vld [vmem:[#allocation2] sm:$0xff] }
  0x20   :  { %s159_s22 = smov [#allocation6]  }
  0x21   :  { %s68_s23 = sshll.u32 %s159_s22, 4  ;;  %s69_s23 = int_to_ptr.vmem [resolvable:$true] %s68_s23 }
  0x22   :  { %s131_s2 = scalar_lea.vmem %s69_s23, 128  ;;  %p136_p11 = scmp.lt.s32.totalorder %s69_s23, %s69_s23 }
  0x23   :  { %p132_p10 = scmp.ne.s32.totalorder %s69_s23, %s131_s2  ;;  %p137_p12 = scmp.lt.s32.totalorder %s131_s2, %s131_s2 }
  0x24   :  { %v88_v6 = vpop.eup %87 }
  0x25   :  { %v34_v7 = vadd.f32 1.0, %v88_v6  ;;  %v37_v8 = vmul.f32 -0.5, %v88_v6  ;;  %v40_v10 = vand.u32 2147483647, %v88_v6  ;;  %p138_p13 = por %p137_p12, %p136_p11 }
  0x27   :  { %89 = vlog2.f32 %v34_v7  ;;  %v38_v9 = vadd.f32 1.0, %v37_v8  ;;  %vm41_vm0 = vcmp.lt.f32.partialorder %v40_v10, 0.0004427343  ;;  %p139_p0 = pnand %p138_p13, %p132_p10 }
  0x29   :  { %v39_v11 = vmul.f32 %v88_v6, %v38_v9 }
  0x34   :  { %v90_v12 = vpop.eup %89 }
  0x35   :  { %v36_v14 = vmul.f32 0.6931472, %v90_v12 }
  0x37   :  { %v42_v16 = vsel %vm41_vm0, %v39_v11, %v36_v14 }
  0x38   :  { %v43_v17 = vadd.f32 %v42_v16, %v29_v13 }
  0x3a   :  { %v45_v18 = vadd.f32 %v81_v15, %v43_v17 }
  0x3c   :  { %v46_v20 = vmul.f32 -2.0, %v45_v18 }
  0x3e   :  { %v50_v21 = vadd.f32 %v49_v19, %v46_v20 }
  0x40   :  { %51 = vst [vmem:[#allocation6] sm:$0xff] %v50_v21 }
  0x41   :  { %142 = shalt.err (!%p139_p0)
}
  0x42   :  { %71 = dma.vmem_to_hbm [thread:$0]  %s69_s23, 128, %s195_s3, [#allocation7]  }
  0x43   :  { %153 = dma.done.wait [#allocation4], 128  }
  0x44   :  { %154 = vsyncadd [#allocation4], 4294967168 }
  0x45   :  { %155 = dma.done.wait [#allocation7], 128  }
  0x46   :  { %156 = vsyncadd [#allocation7], 4294967168 }
  0x47   :  { %78 = vsyncpa [#allocation3], 1 }
  0x48   :  { %79 = vsyncpa [#allocation4], 1 }
  0x49   :  { %80 = vsyncpa [#allocation7], 1 }

</bundles_post_ra>
